<compile_context>
chip_gen: v5e
topology: v5e:2x2
jax: 0.10.0
libtpu: 0.0.40
codegen_flags: <defaults>
</compile_context>

<pallas_src>
import functools

import jax
import jax.numpy as jnp
from jax import lax
from jax.experimental import pallas as pl
from jax.experimental.pallas import tpu as pltpu

TEMPERATURE = 0.07
BASE_TEMPERATURE = 0.07


def _supcon_tile_kernel(anchor_ref, contrast_ref, alab_ref, clab_ref,
                        loss_sum_ref, valid_ref, *,
                        n_anchor_real, n_contrast_real,
                        temperature, base_temperature):
    """One anchor-row tile of the SupCon loss.

    anchor_ref:   [TM, Dp]     bf16 (row tile of anchors, 1/T folded in-kernel)
    contrast_ref: [Dp, Nc_pad] bf16 K-major RHS (resident, single-buffered)
    alab_ref:     [TM, 1]      int32 anchor labels (-1 for padded rows)
    clab_ref:     [1, Nc_pad]  int32 contrast labels (-1 for padded cols)
    loss_sum_ref: [1, 1, 1]    f32 sum of per-row losses over valid rows
    valid_ref:    [1, 1, 1]    f32 number of valid rows in this tile
    """
    tm = anchor_ref.shape[0]
    nc = contrast_ref.shape[1]

    # Fold 1/T into the anchor operand (TM*Dp mults instead of TM*Nc).
    inv_t = jnp.float32(1.0 / temperature)
    a = (anchor_ref[...].astype(jnp.float32) * inv_t).astype(jnp.bfloat16)
    c = contrast_ref[...]  # bf16, already K-major -> clean MXU push

    logits = lax.dot_general(
        a, c,
        dimension_numbers=(((1,), (0,)), ((), ())),
        preferred_element_type=jnp.float32,
    )  # [TM, Nc_pad] f32

    # Narrow iotas; comparisons broadcast (no [TM,Nc] int32 temporaries).
    row0 = pl.program_id(0) * tm
    row_ids = row0 + lax.broadcasted_iota(jnp.int32, (tm, 1), 0)   # [TM, 1]
    col_ids = lax.broadcasted_iota(jnp.int32, (1, nc), 1)          # [1, Nc]

    col_real = col_ids < n_contrast_real
    keep = jnp.logical_and(row_ids != col_ids, col_real)           # logits_mask
    pos_mask = jnp.logical_and(alab_ref[...] == clab_ref[...], keep)

    # Numerical-stability shift (result is shift-invariant; matches torch).
    row_max = jnp.max(logits, axis=1, keepdims=True)
    shifted = logits - row_max

    exp_s = jnp.exp(shifted)
    denom = jnp.sum(jnp.where(keep, exp_s, 0.0), axis=1, keepdims=True)       # [TM,1]
    pos_sum = jnp.sum(jnp.where(pos_mask, shifted, 0.0), axis=1, keepdims=True)
    pos_cnt = jnp.sum(pos_mask.astype(jnp.float32), axis=1, keepdims=True)

    # Valid = real (non-padded) anchor row with at least one positive.
    row_valid = jnp.logical_and(row_ids < n_anchor_real, pos_cnt > 0.0)

    # Exact divide over only [TM,1] elements (not on the critical path).
    mean_log_prob_pos = pos_sum / jnp.maximum(pos_cnt, 1.0) - jnp.log(denom)
    per_row = jnp.where(
        row_valid,
        (-(temperature / base_temperature)) * mean_log_prob_pos,
        0.0,
    )

    loss_sum_ref[...] = jnp.sum(per_row, axis=0, keepdims=True).reshape(1, 1, 1)
    valid_ref[...] = jnp.sum(row_valid.astype(jnp.float32),
                             axis=0, keepdims=True).reshape(1, 1, 1)


def _round_up(x, m):
    return ((x + m - 1) // m) * m


def _tpu_generation_and_vmem():
    """Return (prefer_256_row_tiles, vmem_limit_bytes) — generation aware."""
    vmem_cap = None
    kind = ""
    try:
        info = pltpu.get_tpu_info()
        vmem_cap = int(getattr(info, "vmem_capacity_bytes", 0)) or None
        kind = str(getattr(info, "chip_version", "") or "").lower()
    except Exception:
        pass
    if not kind:
        try:
            kind = jax.devices()[0].device_kind.lower()
        except Exception:
            kind = ""
    if vmem_cap is None:
        # Fallback: v7x has 64 MiB/TC, earlier generations 128 MiB.
        vmem_cap = (64 if "v7" in kind else 128) * 1024 * 1024
    # Older generations (v2-v5) have 128-wide MXUs; v6e/v7x are 256-wide.
    prefer_256 = not any(g in kind for g in ("v2", "v3", "v4", "v5"))
    vmem_limit = int(vmem_cap * 0.75)   # leave headroom for pipeline buffers
    return prefer_256, vmem_limit


def _choose_row_tile(n_anchor, target_tm):
    """Pick (tile, padded_rows). Prefer MXU-width tiles and >=2 grid steps
    (so ("parallel",) can shard across both v7x TensorCores)."""
    candidates = (target_tm, 128) if target_tm != 128 else (128,)
    for tm in candidates:
        na_pad = _round_up(n_anchor, tm)
        if na_pad // tm >= 2:
            return tm, na_pad
    # Small problem: one full 128-row MXU-width tile, padded with dummy rows.
    return 128, 128


def _resident_spec(block_shape, index_map):
    """Single-buffer a grid-invariant operand (constant index_map)."""
    buffered = getattr(pl, "Buffered", None)
    if buffered is not None:
        try:
            return pl.BlockSpec(block_shape, index_map, pipeline_mode=buffered(1))
        except TypeError:   # older jax without pipeline_mode kwarg
            pass
    return pl.BlockSpec(block_shape, index_map)


def supcon_loss(features, labels=None, mask=None, contrast_mode="all"):
    """JAX/Pallas equivalent of SupConLoss.forward.

    features: [bsz, n_views, ...]  (trailing dims flattened)
    labels:   optional [bsz] int labels
    Returns a scalar f32 loss.
    """
    if features.ndim < 3:
        raise ValueError("`features` needs to be [bsz, n_views, ...]")
    bsz, n_views = features.shape[0], features.shape[1]
    feat = features.reshape(bsz, n_views, -1).astype(jnp.float32)
    d = feat.shape[-1]

    if labels is not None and mask is not None:
        raise ValueError("Cannot define both `labels` and `mask`")
    if mask is not None:
        # TODO(synk): arbitrary [bsz,bsz] mask path needs a kernel variant that
        # streams row tiles of the mask; BertHSLN.forward only uses the labels path.
        raise NotImplementedError("explicit `mask` path not implemented in the Pallas kernel")
    if labels is None:
        # eye(bsz) positive mask == every sample is its own (unique) class
        eff_labels = jnp.arange(bsz, dtype=jnp.int32)
    else:
        eff_labels = jnp.asarray(labels).reshape(-1).astype(jnp.int32)
        if eff_labels.shape[0] != bsz:
            raise ValueError("Num of labels does not match num of features")

    # View-major stacking == torch.cat(torch.unbind(features, dim=1), dim=0)
    contrast_feature = jnp.swapaxes(feat, 0, 1).reshape(bsz * n_views, d)
    contrast_labels = jnp.tile(eff_labels, (n_views,))          # [Nc]

    if contrast_mode == "one":
        anchor_feature = feat[:, 0]
        anchor_labels = eff_labels
    elif contrast_mode == "all":
        anchor_feature = contrast_feature
        anchor_labels = contrast_labels
    else:
        raise ValueError(f"Unknown mode: {contrast_mode}")

    n_anchor = anchor_feature.shape[0]
    n_contrast = contrast_feature.shape[0]

    prefer_256, vmem_limit = _tpu_generation_and_vmem()
    tm, na_pad = _choose_row_tile(n_anchor, 256 if prefer_256 else 128)
    n_tiles = na_pad // tm

    # Lane/MXU alignment: pad feature dim and contrast count to multiples of 128.
    d_pad = _round_up(d, 128)
    nc_pad = _round_up(n_contrast, 128)

    # Anchor: [Na_pad, Dp] bf16 row tiles; dummy rows get sentinel label -1.
    anchor = jnp.pad(anchor_feature, ((0, na_pad - n_anchor), (0, d_pad - d)))
    anchor_bf16 = anchor.astype(jnp.bfloat16)
    anchor_lab = jnp.pad(anchor_labels, ((0, na_pad - n_anchor),),
                         constant_values=-1).reshape(na_pad, 1)

    # Contrast: one-time XLA transpose in HBM -> K-major [Dp, Nc_pad] bf16 RHS.
    contrast = jnp.pad(contrast_feature, ((0, nc_pad - n_contrast), (0, d_pad - d)))
    contrast_t_bf16 = contrast.T.astype(jnp.bfloat16)           # [Dp, Nc_pad]
    contrast_lab = jnp.pad(contrast_labels, ((0, nc_pad - n_contrast),),
                           constant_values=-1).reshape(1, nc_pad)

    kernel = functools.partial(
        _supcon_tile_kernel,
        n_anchor_real=n_anchor, n_contrast_real=n_contrast,
        temperature=TEMPERATURE, base_temperature=BASE_TEMPERATURE)

    flops = 2 * na_pad * nc_pad * d_pad
    bytes_accessed = (2 * (na_pad * d_pad + d_pad * nc_pad)
                      + 4 * (na_pad + nc_pad) + 8 * n_tiles)
    cost = pl.CostEstimate(flops=flops, transcendentals=na_pad * nc_pad,
                           bytes_accessed=bytes_accessed)

    loss_parts, valid_parts = pl.pallas_call(
        kernel,
        out_shape=(jax.ShapeDtypeStruct((n_tiles, 1, 1), jnp.float32),
                   jax.ShapeDtypeStruct((n_tiles, 1, 1), jnp.float32)),
        grid=(n_tiles,),
        in_specs=[
            pl.BlockSpec((tm, d_pad), lambda i: (i, 0)),             # anchor tile
            _resident_spec((d_pad, nc_pad), lambda i: (0, 0)),        # contrast (resident)
            pl.BlockSpec((tm, 1), lambda i: (i, 0)),                  # anchor labels
            _resident_spec((1, nc_pad), lambda i: (0, 0)),            # contrast labels
        ],
        out_specs=(pl.BlockSpec((1, 1, 1), lambda i: (i, 0, 0)),
                   pl.BlockSpec((1, 1, 1), lambda i: (i, 0, 0))),
        compiler_params=pltpu.CompilerParams(
            dimension_semantics=("parallel",),    # shard row tiles across TCs (v7x)
            vmem_limit_bytes=vmem_limit,
        ),
        cost_estimate=cost,
    )(anchor_bf16, contrast_t_bf16, anchor_lab, contrast_lab)

    # loss.view(anchor_count, bsz).mean()  == mean over valid anchor rows.
    total = jnp.sum(loss_parts)
    count = jnp.sum(valid_parts)
    return total / jnp.maximum(count, 1.0)


def _supcon_loss_ref(features, labels=None, contrast_mode="all", mirror_bf16=True):
    """Pure-JAX reference mirroring the PyTorch code.

    mirror_bf16=True mirrors the kernel's bf16-operand / f32-accumulate matmul so the
    comparison isolates algorithmic correctness from bf16 quantization of the inputs.
    """
    bsz, n_views = features.shape[0], features.shape[1]
    feat = features.reshape(bsz, n_views, -1).astype(jnp.float32)
    if labels is None:
        base_mask = jnp.eye(bsz, dtype=jnp.float32)
    else:
        lab = jnp.asarray(labels).reshape(-1, 1)
        base_mask = (lab == lab.T).astype(jnp.float32)

    contrast = jnp.swapaxes(feat, 0, 1).reshape(bsz * n_views, -1)
    if contrast_mode == "one":
        anchor, anchor_count = feat[:, 0], 1
    else:
        anchor, anchor_count = contrast, n_views

    if mirror_bf16:
        inv_t = jnp.float32(1.0 / TEMPERATURE)
        a = (anchor.astype(jnp.bfloat16).astype(jnp.float32) * inv_t).astype(jnp.bfloat16)
        c = contrast.astype(jnp.bfloat16)
        logits = jnp.dot(a, c.T, preferred_element_type=jnp.float32)
    else:
        logits = (anchor @ contrast.T) / TEMPERATURE

    na, ncnt = logits.shape
    logits = logits - jnp.max(logits, axis=1, keepdims=True)
    mask = jnp.tile(base_mask, (anchor_count, n_views))
    lmask = 1.0 - jnp.eye(na, ncnt, dtype=jnp.float32)
    mask = mask * lmask
    exp_logits = jnp.exp(logits) * lmask
    log_prob = logits - jnp.log(exp_logits.sum(1, keepdims=True))
    mean_log_prob_pos = (mask * log_prob).sum(1) / mask.sum(1)
    loss = -(TEMPERATURE / BASE_TEMPERATURE) * mean_log_prob_pos
    return loss.mean()


if __name__ == "__main__":
    key = jax.random.PRNGKey(0)
    k_feat, k_lab = jax.random.split(key)

    bsz, n_views, feat_dim = 8, 2, 32
    features = jax.random.normal(k_feat, (bsz, n_views, feat_dim), dtype=jnp.float32)
    # L2-normalize (as done via F.normalize before supcon_loss in BertHSLN.forward)
    features = features / jnp.linalg.norm(features, axis=-1, keepdims=True)
    labels = jax.random.randint(k_lab, (bsz,), 0, 4)

    def _check(got, want_mirror, want_f32, name):
        got = jax.block_until_ready(got)
        # Tight check vs the bf16-mirrored reference (same quantization as kernel);
        # looser check vs the full-f32 torch-style reference (bf16 matmul tolerance).
        assert jnp.allclose(got, want_mirror, rtol=1e-2, atol=1e-2), (name, got, want_mirror)
        assert jnp.allclose(got, want_f32, rtol=5e-2, atol=1e-1), (name, got, want_f32)

    # Unsupervised (SimCLR, mask = eye), contrast_mode='all'
    loss_u = supcon_loss(features)
    _check(loss_u,
           _supcon_loss_ref(features, None, "all", mirror_bf16=True),
           _supcon_loss_ref(features, None, "all", mirror_bf16=False),
           "unsup_all")

    # Supervised (label-defined positives), contrast_mode='all'  (path used in BertHSLN)
    loss_s = supcon_loss(features, labels=labels)
    _check(loss_s,
           _supcon_loss_ref(features, labels, "all", mirror_bf16=True),
           _supcon_loss_ref(features, labels, "all", mirror_bf16=False),
           "sup_all")

    # Supervised, contrast_mode='one' (supcon_loss_one in the module)
    loss_o = supcon_loss(features, labels=labels, contrast_mode="one")
    _check(loss_o,
           _supcon_loss_ref(features, labels, "one", mirror_bf16=True),
           _supcon_loss_ref(features, labels, "one", mirror_bf16=False),
           "sup_one")

    print("KERNEL_OK")
</pallas_src>

<mosaic_0001>
module attributes {stable_mosaic.version = 11 : i64} {
  func.func @_supcon_tile_kernel(%arg0: i32, %arg1: memref<128x128xbf16, #tpu.memory_space<vmem>>, %arg2: memref<128x128xbf16, #tpu.memory_space<vmem>>, %arg3: memref<128x1xi32, #tpu.memory_space<vmem>>, %arg4: memref<1x128xi32, #tpu.memory_space<vmem>>, %arg5: memref<1x1x1xf32, #tpu.memory_space<vmem>>, %arg6: memref<1x1x1xf32, #tpu.memory_space<vmem>>) attributes {dimension_semantics = [#tpu.dimension_semantics<parallel>], iteration_bounds = array<i64: 1>, scalar_prefetch = 0 : i64, scratch_operands = 0 : i64, tpu.core_type = #tpu.core_type<tc>, window_params = [{transform_indices = @transform_0, window_bounds = array<i64: 128, 128>}, {pipeline_mode = #tpu.pipeline_mode<synchronous>, transform_indices = @transform_1, window_bounds = array<i64: 128, 128>}, {transform_indices = @transform_2, window_bounds = array<i64: 128, 1>}, {pipeline_mode = #tpu.pipeline_mode<synchronous>, transform_indices = @transform_3, window_bounds = array<i64: 1, 128>}, {transform_indices = @transform_4, window_bounds = array<i64: 1, 1, 1>}, {transform_indices = @transform_5, window_bounds = array<i64: 1, 1, 1>}]} {
    %c0 = arith.constant 0 : index
    %c0_0 = arith.constant 0 : index
    %0 = vector.load %arg1[%c0, %c0_0] : memref<128x128xbf16, #tpu.memory_space<vmem>>, vector<128x128xbf16>
    %1 = arith.extf %0 : vector<128x128xbf16> to vector<128x128xf32>
    %cst = arith.constant 14.2857141 : f32
    %2 = vector.broadcast %cst : f32 to vector<128x128xf32>
    %3 = arith.mulf %1, %2 : vector<128x128xf32>
    %4 = arith.truncf %3 : vector<128x128xf32> to vector<128x128xbf16>
    %c0_1 = arith.constant 0 : index
    %c0_2 = arith.constant 0 : index
    %5 = vector.load %arg2[%c0_1, %c0_2] : memref<128x128xbf16, #tpu.memory_space<vmem>>, vector<128x128xbf16>
    %cst_3 = arith.constant dense<0.000000e+00> : vector<128x128xf32>
    %6 = tpu.matmul %4, %5, %cst_3 {dimension_numbers = #tpu.dot_dimension_numbers<[1], [0], [0], [1], [0, 0, 1, 1], [], []>} : vector<128x128xbf16>, vector<128x128xbf16>, vector<128x128xf32> -> vector<128x128xf32>
    %c128_i32 = arith.constant 128 : i32
    %7 = arith.muli %arg0, %c128_i32 : i32
    %8 = tpu.iota {dimensions = array<i32: 0>} : vector<128x1xi32>
    %9 = vector.broadcast %7 : i32 to vector<128x1xi32>
    %10 = arith.addi %9, %8 : vector<128x1xi32>
    %11 = tpu.iota {dimensions = array<i32: 1>} : vector<1x128xi32>
    %c16_i32 = arith.constant 16 : i32
    %12 = vector.broadcast %c16_i32 : i32 to vector<1x128xi32>
    %13 = arith.cmpi slt, %11, %12 : vector<1x128xi32>
    %14 = vector.broadcast %10 : vector<128x1xi32> to vector<128x128xi32>
    %15 = vector.broadcast %11 : vector<1x128xi32> to vector<128x128xi32>
    %16 = arith.cmpi ne, %14, %15 : vector<128x128xi32>
    %17 = vector.broadcast %13 : vector<1x128xi1> to vector<128x128xi1>
    %18 = arith.andi %16, %17 : vector<128x128xi1>
    %c0_4 = arith.constant 0 : index
    %c0_5 = arith.constant 0 : index
    %19 = vector.load %arg3[%c0_4, %c0_5] : memref<128x1xi32, #tpu.memory_space<vmem>>, vector<128x1xi32>
    %c0_6 = arith.constant 0 : index
    %c0_7 = arith.constant 0 : index
    %20 = vector.load %arg4[%c0_6, %c0_7] : memref<1x128xi32, #tpu.memory_space<vmem>>, vector<1x128xi32>
    %21 = vector.broadcast %19 : vector<128x1xi32> to vector<128x128xi32>
    %22 = vector.broadcast %20 : vector<1x128xi32> to vector<128x128xi32>
    %23 = arith.cmpi eq, %21, %22 : vector<128x128xi32>
    %24 = arith.andi %23, %18 : vector<128x128xi1>
    %cst_8 = arith.constant dense<0xFF800000> : vector<128xf32>
    %25 = vector.multi_reduction <maximumf>, %6, %cst_8 [1] : vector<128x128xf32> to vector<128xf32>
    %26 = vector.shape_cast %25 : vector<128xf32> to vector<128x1xf32>
    %27 = vector.broadcast %26 : vector<128x1xf32> to vector<128x128xf32>
    %28 = arith.subf %6, %27 : vector<128x128xf32>
    %29 = math.exp %28 : vector<128x128xf32>
    %cst_9 = arith.constant 0.000000e+00 : f32
    %30 = vector.broadcast %cst_9 : f32 to vector<128x128xf32>
    %31 = arith.select %18, %29, %30 : vector<128x128xi1>, vector<128x128xf32>
    %cst_10 = arith.constant dense<0.000000e+00> : vector<128xf32>
    %32 = vector.multi_reduction <add>, %31, %cst_10 [1] : vector<128x128xf32> to vector<128xf32>
    %33 = vector.shape_cast %32 : vector<128xf32> to vector<128x1xf32>
    %cst_11 = arith.constant 0.000000e+00 : f32
    %34 = vector.broadcast %cst_11 : f32 to vector<128x128xf32>
    %35 = arith.select %24, %28, %34 : vector<128x128xi1>, vector<128x128xf32>
    %cst_12 = arith.constant dense<0.000000e+00> : vector<128xf32>
    %36 = vector.multi_reduction <add>, %35, %cst_12 [1] : vector<128x128xf32> to vector<128xf32>
    %37 = vector.shape_cast %36 : vector<128xf32> to vector<128x1xf32>
    %38 = arith.extui %24 : vector<128x128xi1> to vector<128x128xi32>
    %39 = arith.sitofp %38 : vector<128x128xi32> to vector<128x128xf32>
    %cst_13 = arith.constant dense<0.000000e+00> : vector<128xf32>
    %40 = vector.multi_reduction <add>, %39, %cst_13 [1] : vector<128x128xf32> to vector<128xf32>
    %41 = vector.shape_cast %40 : vector<128xf32> to vector<128x1xf32>
    %c16_i32_14 = arith.constant 16 : i32
    %42 = vector.broadcast %c16_i32_14 : i32 to vector<128x1xi32>
    %43 = arith.cmpi slt, %10, %42 : vector<128x1xi32>
    %cst_15 = arith.constant 0.000000e+00 : f32
    %44 = vector.broadcast %cst_15 : f32 to vector<128x1xf32>
    %45 = arith.cmpf ogt, %41, %44 : vector<128x1xf32>
    %46 = arith.andi %43, %45 : vector<128x1xi1>
    %cst_16 = arith.constant 1.000000e+00 : f32
    %47 = vector.broadcast %cst_16 : f32 to vector<128x1xf32>
    %48 = arith.maximumf %41, %47 : vector<128x1xf32>
    %49 = arith.divf %37, %48 : vector<128x1xf32>
    %50 = math.log %33 : vector<128x1xf32>
    %51 = arith.subf %49, %50 : vector<128x1xf32>
    %cst_17 = arith.constant -1.000000e+00 : f32
    %52 = vector.broadcast %cst_17 : f32 to vector<128x1xf32>
    %53 = arith.mulf %52, %51 : vector<128x1xf32>
    %cst_18 = arith.constant 0.000000e+00 : f32
    %54 = vector.broadcast %cst_18 : f32 to vector<128x1xf32>
    %55 = arith.select %46, %53, %54 : vector<128x1xi1>, vector<128x1xf32>
    %cst_19 = arith.constant dense<0.000000e+00> : vector<1xf32>
    %56 = vector.multi_reduction <add>, %55, %cst_19 [0] : vector<128x1xf32> to vector<1xf32>
    %57 = vector.shape_cast %56 : vector<1xf32> to vector<1x1xf32>
    %58 = vector.shape_cast %57 : vector<1x1xf32> to vector<1x1x1xf32>
    %c0_20 = arith.constant 0 : index
    %c0_21 = arith.constant 0 : index
    %c0_22 = arith.constant 0 : index
    %59 = vector.load %arg5[%c0_20, %c0_21, %c0_22] : memref<1x1x1xf32, #tpu.memory_space<vmem>>, vector<1x1x1xf32>
    tpu.vector_store %arg5[%c0_20, %c0_21, %c0_22], %58 {strides = array<i32>} : memref<1x1x1xf32, #tpu.memory_space<vmem>>, vector<1x1x1xf32>,
    %60 = arith.extui %46 : vector<128x1xi1> to vector<128x1xi32>
    %61 = arith.sitofp %60 : vector<128x1xi32> to vector<128x1xf32>
    %cst_23 = arith.constant dense<0.000000e+00> : vector<1xf32>
    %62 = vector.multi_reduction <add>, %61, %cst_23 [0] : vector<128x1xf32> to vector<1xf32>
    %63 = vector.shape_cast %62 : vector<1xf32> to vector<1x1xf32>
    %64 = vector.shape_cast %63 : vector<1x1xf32> to vector<1x1x1xf32>
    %c0_24 = arith.constant 0 : index
    %c0_25 = arith.constant 0 : index
    %c0_26 = arith.constant 0 : index
    %65 = vector.load %arg6[%c0_24, %c0_25, %c0_26] : memref<1x1x1xf32, #tpu.memory_space<vmem>>, vector<1x1x1xf32>
    tpu.vector_store %arg6[%c0_24, %c0_25, %c0_26], %64 {strides = array<i32>} : memref<1x1x1xf32, #tpu.memory_space<vmem>>, vector<1x1x1xf32>,
    return
  }
  func.func @transform_0(%arg0: i32) -> (i32, i32) {
    %c0_i32 = arith.constant 0 : i32
    %c0_i32_0 = arith.constant 0 : i32
    return %arg0, %c0_i32 : i32, i32
  }
  func.func @transform_1(%arg0: i32) -> (i32, i32) {
    %c0_i32 = arith.constant 0 : i32
    %c0_i32_0 = arith.constant 0 : i32
    %c0_i32_1 = arith.constant 0 : i32
    return %c0_i32, %c0_i32_0 : i32, i32
  }
  func.func @transform_2(%arg0: i32) -> (i32, i32) {
    %c0_i32 = arith.constant 0 : i32
    %c0_i32_0 = arith.constant 0 : i32
    return %arg0, %c0_i32 : i32, i32
  }
  func.func @transform_3(%arg0: i32) -> (i32, i32) {
    %c0_i32 = arith.constant 0 : i32
    %c0_i32_0 = arith.constant 0 : i32
    %c0_i32_1 = arith.constant 0 : i32
    return %c0_i32, %c0_i32_0 : i32, i32
  }
  func.func @transform_4(%arg0: i32) -> (i32, i32, i32) {
    %c0_i32 = arith.constant 0 : i32
    %c0_i32_0 = arith.constant 0 : i32
    %c0_i32_1 = arith.constant 0 : i32
    return %arg0, %c0_i32, %c0_i32_0 : i32, i32, i32
  }
  func.func @transform_5(%arg0: i32) -> (i32, i32, i32) {
    %c0_i32 = arith.constant 0 : i32
    %c0_i32_0 = arith.constant 0 : i32
    %c0_i32_1 = arith.constant 0 : i32
    return %arg0, %c0_i32, %c0_i32_0 : i32, i32, i32
  }
}

</mosaic_0001>

<bundles_post_ra>
// kernel: tpu_custom_call.1
= control target key start
LH: loop header
LB: loop body
LE: loop exit
PB: predicated region body
PF: predicated region fallthrough
CT: control target
= control target key end

     0   :  { %11 = vsyncpa [#allocation3], 0  ;;  %v1284_v2 = vmov 0   ;;  %s1435_s0 = inlined_call_operand.vmem [shape: bf16[128,128], index: 0, kind: input, shape index: {}]   ;;  %s1436_s1 = inlined_call_operand.vmem [shape: bf16[128,128], index: 1, kind: input, shape index: {}]   ;;  %s1437_s2 = inlined_call_operand.vmem [shape: s32[128,1], index: 2, kind: input, shape index: {}]   ;;  %s1438_s3 = inlined_call_operand.vmem [shape: s32[1,128], index: 3, kind: input, shape index: {}]   ;;  %s1439_s4 = inlined_call_operand.hbm [shape: f32[1,1,1], index: 4, kind: output, shape index: {0}]   ;;  %s1440_s5 = inlined_call_operand.hbm [shape: f32[1,1,1], index: 5, kind: output, shape index: {1}]  }
   0x1   :  { %v1150_v0 = vld [vmem:[%s1436_s1 + $0x38] sm:$0xff]  ;;  %v1149_v1 = vld [vmem:[%s1436_s1 + $0x30] sm:$0xff]  ;;  %1218 = vset.pattern.permute.xlu0 %v1284_v2  ;;  %v262_v3 = vld [vmem:[%s1437_s2] sm:$0xff] }
   0x2   :  { %141 = vmatpush.bf16.msra.mxu0 %v1150_v0  ;;  %1191 = vmatpush.bf16.msra.mxu2 %v1150_v0 }
   0x3   :  { %1192 = vmatpush.bf16.msra.mxu3 %v1150_v0  ;;  %280 = vperm.xlu0 %1218, %v262_v3  }
   0x4   :  { %1190 = vmatpush.bf16.msra.mxu1 %v1150_v0 }
   0x5   :  { %12 = vsyncpa [#allocation5], 0  ;;  %v1148_v4 = vld [vmem:[%s1436_s1 + $0x28] sm:$0xff]  ;;  %v1147_v6 = vld [vmem:[%s1436_s1 + $0x20] sm:$0xff]  ;;  %v191_v19 = vlaneseq  ;;  %v1285_v25 = vmov 0.0   ;;  %s1079_s6 = sshll.u32 %s1440_s5, 4  ;;  %s1080_s6 = int_to_ptr.hbm [resolvable:$true] %s1079_s6 }
   0x6   :  { %142 = vmatpush.bf16.msra.mxu0 %v1149_v1  ;;  %1194 = vmatpush.bf16.msra.mxu2 %v1149_v1  ;;  %v263_v5 = vld [vmem:[%s1437_s2 + $0x8] sm:$0xff]  ;;  %v1146_v7 = vld [vmem:[%s1436_s1 + $0x18] sm:$0xff]  ;;  %v1145_v8 = vld [vmem:[%s1436_s1 + $0x10] sm:$0xff]  ;;  %vm1005_vm11 = vcmask 0   ;;  %s1287_s5 = smov [#allocation2]   ;;  %s1068_s9 = sshll.u32 %s1439_s4, 4  ;;  %s1069_s9 = int_to_ptr.hbm [resolvable:$true] %s1068_s9 }
   0x7   :  { %1195 = vmatpush.bf16.msra.mxu3 %v1149_v1  ;;  %v1152_v9 = vld [vmem:[%s1435_s0] sm:$0xff]   ;;  %v1144_v12 = vld [vmem:[%s1436_s1 + $0x8] sm:$0xff]  ;;  %v192_v20 = vshrl.u32 %v191_v19, 7  ;;  %v226_v21 = vand.u32 127, %v191_v19  ;;  %v1188_v34 = vld [vmem:[%s1435_s0 + $0x30] sm:$0xff]   ;;  %s1066_s7 = sshll.u32 %s1287_s5, 4  ;;  %s1067_s7 = int_to_ptr.vmem [resolvable:$true] %s1066_s7 }
   0x8   :  { %1193 = vmatpush.bf16.msra.mxu1 %v1149_v1  ;;  %v1153_v10 = vunpack.c.l.bf16 %v1152_v9  ;;  %v1154_v11 = vunpack.c.h.bf16 %v1152_v9  ;;  %v1143_v15 = vld [vmem:[%s1436_s1] sm:$0xff]  ;;  %v1177_v37 = vunpack.c.l.bf16 %v1188_v34  ;;  %v1178_v38 = vunpack.c.h.bf16 %v1188_v34  ;;  %v1184_v45 = vld [vmem:[%s1435_s0 + $0x10] sm:$0xff]   ;;  %v1187_v51 = vld [vmem:[%s1435_s0 + $0x28] sm:$0xff]  }
   0x9   :  { %v1219_v17 = vld [vmem:[%s1438_s3] ss:$0 sm:$0xff]  ;;  %vm227_vm1 = vcmp.lt.s32.totalorder %v226_v21, 16  ;;  %vm228_vm2 = vcmp.ne.s32.totalorder %v192_v20, %v226_v21  ;;  %v193_v22 = vadd.s32 8, %v192_v20  ;;  %v1161_v46 = vunpack.c.l.bf16 %v1184_v45  ;;  %v1189_v52 = vld [vmem:[%s1435_s0 + $0x38] sm:$0xff]   ;;  %v1183_v63 = vld [vmem:[%s1435_s0 + $0x8] sm:$0xff]  }
   0xa   :  { %143 = vmatpush.bf16.msra.mxu0 %v1148_v4  ;;  %1197 = vmatpush.bf16.msra.mxu2 %v1148_v4  ;;  %v53_v13 = vmul.f32 14.285714, %v1153_v10  ;;  %v54_v14 = vmul.f32 14.285714, %v1154_v11  ;;  %vm1354_vm3 = vmand %vm228_vm2, %vm227_vm1  ;;  %v1186_v33 = vld [vmem:[%s1435_s0 + $0x20] sm:$0xff]   ;;  %v1162_v47 = vunpack.c.h.bf16 %v1184_v45  ;;  %v1173_v53 = vunpack.c.l.bf16 %v1187_v51  ;;  %v1185_v0 = vld [vmem:[%s1435_s0 + $0x18] sm:$0xff]  }
   0xb   :  { %1198 = vmatpush.bf16.msra.mxu3 %v1148_v4  ;;  %283 = vperm.xlu0 %1218, %v263_v5   ;;  %vm229_vm5 = vcmp.ne.s32.totalorder %v193_v22, %v226_v21  ;;  %v1169_v35 = vunpack.c.l.bf16 %v1186_v33  ;;  %v1170_v36 = vunpack.c.h.bf16 %v1186_v33  ;;  %v65_v41 = vmul.f32 14.285714, %v1177_v37  ;;  %s1286_s0 = smov [#allocation4]  }
   0xc   :  { %1196 = vmatpush.bf16.msra.mxu1 %v1148_v4  ;;  %v69_v16 = vpack.c.bf16 %v54_v14, %v53_v13  ;;  %vm1367_vm6 = vmand %vm229_vm5, %vm227_vm1  ;;  %v66_v42 = vmul.f32 14.285714, %v1178_v38  ;;  %v57_v48 = vmul.f32 14.285714, %v1161_v46  ;;  %v58_v49 = vmul.f32 14.285714, %v1162_v47 }
   0xd   :  { %v61_v39 = vmul.f32 14.285714, %v1169_v35  ;;  %v62_v40 = vmul.f32 14.285714, %v1170_v36  ;;  %v1174_v54 = vunpack.c.h.bf16 %v1187_v51  ;;  %v1181_v55 = vunpack.c.l.bf16 %v1189_v52  ;;  %s1077_s28 = sshll.u32 %s1286_s0, 4  ;;  %s1078_s28 = int_to_ptr.vmem [resolvable:$true] %s1077_s28 }
   0xe   :  { %144 = vmatpush.bf16.msra.mxu0 %v1147_v6  ;;  %1200 = vmatpush.bf16.msra.mxu2 %v1147_v6  ;;  %v75_v44 = vpack.c.bf16 %v66_v42, %v65_v41  ;;  %v71_v50 = vpack.c.bf16 %v58_v49, %v57_v48  ;;  %v1182_v56 = vunpack.c.h.bf16 %v1189_v52  ;;  %v63_v57 = vmul.f32 14.285714, %v1173_v53 }
   0xf   :  { %1201 = vmatpush.bf16.msra.mxu3 %v1147_v6  ;;  %v73_v43 = vpack.c.bf16 %v62_v40, %v61_v39  ;;  %v64_v58 = vmul.f32 14.285714, %v1174_v54  ;;  %v67_v59 = vmul.f32 14.285714, %v1181_v55  ;;  %v1157_v1 = vunpack.c.l.bf16 %v1183_v63 }
  0x10   :  { %1199 = vmatpush.bf16.msra.mxu1 %v1147_v6  ;;  %v68_v60 = vmul.f32 14.285714, %v1182_v56  ;;  %v1158_v2 = vunpack.c.h.bf16 %v1183_v63  ;;  %v1165_v3 = vunpack.c.l.bf16 %v1185_v0  ;;  %v1166_v4 = vunpack.c.h.bf16 %v1185_v0 }
  0x11   :  { %v74_v61 = vpack.c.bf16 %v64_v58, %v63_v57  ;;  %v55_v5 = vmul.f32 14.285714, %v1157_v1 }
  0x12   :  { %145 = vmatpush.bf16.msra.mxu0 %v1146_v7  ;;  %1203 = vmatpush.bf16.msra.mxu2 %v1146_v7  ;;  %v76_v62 = vpack.c.bf16 %v68_v60, %v67_v59  ;;  %v56_v6 = vmul.f32 14.285714, %v1158_v2 }
  0x13   :  { %1204 = vmatpush.bf16.msra.mxu3 %v1146_v7 }
  0x14   :  { %1202 = vmatpush.bf16.msra.mxu1 %v1146_v7  ;;  %v59_v7 = vmul.f32 14.285714, %v1165_v3  ;;  %v70_v9 = vpack.c.bf16 %v56_v6, %v55_v5 }
  0x16   :  { %146 = vmatpush.bf16.msra.mxu0 %v1145_v8  ;;  %1206 = vmatpush.bf16.msra.mxu2 %v1145_v8 }
  0x17   :  { %1207 = vmatpush.bf16.msra.mxu3 %v1145_v8 }
  0x18   :  { %1205 = vmatpush.bf16.msra.mxu1 %v1145_v8  ;;  %v60_v8 = vmul.f32 14.285714, %v1166_v4 }
  0x1a   :  { %147 = vmatpush.bf16.msra.mxu0 %v1144_v12  ;;  %1209 = vmatpush.bf16.msra.mxu2 %v1144_v12  ;;  %v72_v10 = vpack.c.bf16 %v60_v8, %v59_v7 }
  0x1b   :  { %1210 = vmatpush.bf16.msra.mxu3 %v1144_v12 }
  0x1c   :  { %1208 = vmatpush.bf16.msra.mxu1 %v1144_v12 }
  0x1e   :  { %148 = vmatpush.bf16.msra.mxu0 %v1143_v15  ;;  %1212 = vmatpush.bf16.msra.mxu2 %v1143_v15 }
  0x1f   :  { %1213 = vmatpush.bf16.msra.mxu3 %v1143_v15 }
  0x20   :  { %1211 = vmatpush.bf16.msra.mxu1 %v1143_v15 }
  0x21   :  { %149 = vmatmul.bf16.vlgmr.msra.gmra.mxu0 %v69_v16  ;;  %169 = vmatmul.bf16.vlgmr.msra.gmra.mxu2 %v73_v43 }
  0x22   :  { %179 = vmatmul.bf16.vlgmr.msra.gmra.mxu3 %v75_v44 }
  0x23   :  { %159 = vmatmul.bf16.vlgmr.msra.gmra.mxu1 %v71_v50 }
  0x31   :  { %174 = vmatmul.bf16.gmra.mxu2 %v74_v61  ;;  %154 = vmatmul.bf16.gmra.mxu0 %v70_v9 }
  0x32   :  { %184 = vmatmul.bf16.gmra.mxu3 %v76_v62 }
  0x33   :  { %164 = vmatmul.bf16.gmra.mxu1 %v72_v10 }
  0x75   :  { %v281_v18 = vpop.permute.xlu0 %280 }
  0x76   :  { %vm328_vm0 = vcmp.eq.s32.totalorder %v281_v18, %v1219_v17 }
  0x77   :  { %vm1360_vm4 = vmand %vm328_vm0, %vm1354_vm3 }
  0x78   :  { %v1125_v26 = vsel %vm1360_vm4, 1.0, %v1285_v25 }
  0x79   :  { %568 = vadd.xlane.f32.xlu2 %v1125_v26 }
  0x7d   :  { %v284_v28 = vpop.permute.xlu0 %283 }
  0x7e   :  { %vm329_vm7 = vcmp.eq.s32.totalorder %v284_v28, %v1219_v17 }
  0x7f   :  { %vm1373_vm8 = vmand %vm329_vm7, %vm1367_vm6 }
  0x80   :  { %v1126_v30 = vsel %vm1373_vm8, 1.0, %v1285_v25 }
  0x81   :  { %570 = vadd.xlane.f32.xlu2 %v1126_v30 }
  0x9e   :  { %v150_v31 = vpop.f32.mrf.mxu0 }
  0x9f   :  { %360 = vmax.xlane.f32.xlu1 %v150_v31 }
  0xa4   :  { %v170_v35 = vpop.f32.mrf.mxu2 }
  0xa5   :  { %v180_v36 = vpop.f32.mrf.mxu3 }
  0xa6   :  { %v152_v32 = vpop.f32.mrf.mxu0 }
  0xa7   :  { %362 = vmax.xlane.f32.xlu1 %v152_v32 }
  0xac   :  { %v172_v39 = vpop.f32.mrf.mxu2 }
  0xad   :  { %v182_v41 = vpop.f32.mrf.mxu3 }
  0xae   :  { %v155_v44 = vpop.f32.mrf.mxu0 }
  0xb4   :  { %v175_v46 = vpop.f32.mrf.mxu2 }
  0xb5   :  { %v185_v47 = vpop.f32.mrf.mxu3 }
  0xb6   :  { %v157_v52 = vpop.f32.mrf.mxu0 }
  0xbc   :  { %v177_v56 = vpop.f32.mrf.mxu2 }
  0xbd   :  { %v187_v57 = vpop.f32.mrf.mxu3 }
  0xec   :  { %v1409_v24 = vpop.xlane.xlu2 %568 }
  0xed   :  { %vm616_vm9 = vcmp.gt.f32.partialorder %v1409_v24, 0.0  ;;  %v648_v37 = vmax.f32 %v1409_v24, 1.0 }
  0xee   :  { %v1141_v23 = vsel %vm616_vm9, 1.0, %v1285_v25 }
  0xef   :  { %vm669_vm12 = vweird.f32 %v648_v37  ;;  %v675_v58 = vand.u32 2147483648, %v648_v37  ;;  %v673_v60 = vand.u32 2147483647, %v648_v37 }
  0xf1   :  { %v676_v62 = vor.u32 1.1754944e-38, %v675_v58  ;;  %vm674_vm15 = vcmp.eq.f32.partialorder %v673_v60, 8.507059e+37 }
  0xf4   :  { %v1411_v26 = vpop.xlane.xlu2 %570 }
  0xf5   :  { %vm617_vm10 = vcmp.gt.f32.partialorder %v1411_v26, 0.0  ;;  %v649_v40 = vmax.f32 %v1411_v26, 1.0 }
  0xf6   :  { %v1142_v27 = vsel %vm617_vm10, 1.0, %v1285_v25  ;;  %v160_v25 = vpop.f32.mrf.mxu1 }
  0xf7   :  { %v1039_v28 = vadd.f32 %v1142_v27, %v1141_v23  ;;  %vm684_vm0 = vweird.f32 %v649_v40  ;;  %v690_v2 = vand.u32 2147483648, %v649_v40  ;;  %v688_v4 = vand.u32 2147483647, %v649_v40 }
  0xf9   :  { %v1054_v29 = vrot.slane %v1039_v28, 4  ;;  %v691_v8 = vor.u32 1.1754944e-38, %v690_v2 }
  0xfb   :  { %v1055_v30 = vadd.f32 %v1054_v29, %v1039_v28 }
  0xfe   :  { %v162_v38 = vpop.f32.mrf.mxu1 }
 0x106   :  { %v165_v45 = vpop.f32.mrf.mxu1 }
 0x10e   :  { %v167_v54 = vpop.f32.mrf.mxu1 }
 0x112   :  { %v361_v11 = vpop.xlane.xlu1 %360 }
 0x113   :  { %v392_v12 = vsub.f32 %v150_v31, %v361_v11  ;;  %v1056_v31 = vrot.slane %v1055_v30, 2 }
 0x115   :  { %v408_v13 = vmul.f32 1.442695, %v392_v12  ;;  %v488_v14 = vsel %vm1360_vm4, %v392_v12, 0.0 }
 0x116   :  { %504 = vadd.xlane.f32.xlu2 %v488_v14 }
 0x117   :  { %1220 = vpow2.f32 %v408_v13 }
 0x11a   :  { %v363_v15 = vpop.xlane.xlu1 %362 }
 0x11b   :  { %v393_v16 = vsub.f32 %v152_v32, %v363_v15  ;;  %v1057_v32 = vadd.f32 %v1056_v31, %v1055_v30 }
 0x11d   :  { %v1221_v17 = vpop.eup %1220  ;;  %v410_v18 = vmul.f32 1.442695, %v393_v16  ;;  %v489_v22 = vsel %vm1373_vm8, %v393_v16, 0.0  ;;  %v1058_v33 = vrot.slane %v1057_v32, 1 }
 0x11e   :  { %v440_v19 = vsel %vm1354_vm3, %v1221_v17, 0.0  ;;  %vm689_vm3 = vcmp.eq.f32.partialorder %v688_v4, 8.507059e+37 }
 0x11f   :  { %1222 = vpow2.f32 %v410_v18  ;;  %456 = vadd.xlane.f32.xlu0 %v440_v19  ;;  %v1059_v34 = vadd.f32 %v1058_v33, %v1057_v32 }
 0x120   :  { %1224 = vrcp.f32 %v648_v37 }
 0x121   :  { %1060 = vst.msk [vmem:[#allocation4] sm:$0x1] %vm1005_vm11, %v1059_v34  ;;  %1226 = vrcp.f32 %v649_v40 }
 0x122   :  { %1082 = dma.vmem_to_hbm [thread:$0]  %s1078_s28, 16, %s1080_s6, [#allocation5]  }
 0x125   :  { %v1223_v20 = vpop.eup %1222 }
 0x126   :  { %v441_v21 = vsel %vm1367_vm6, %v1223_v20, 0.0  ;;  %v1225_v42 = vpop.eup %1224 }
 0x127   :  { %458 = vadd.xlane.f32.xlu1 %v441_v21  ;;  %v665_v43 = vmul.f32 %v1225_v42, %v648_v37  ;;  %v1227_v48 = vpop.eup %1226  ;;  %vm670_vm13 = vweird.f32 %v1225_v42 }
 0x128   :  { %v680_v50 = vmul.f32 %v1227_v48, %v649_v40  ;;  %vm671_vm14 = vmor %vm669_vm12, %vm670_vm13  ;;  %vm685_vm1 = vweird.f32 %v1227_v48 }
 0x129   :  { %v666_v49 = vsub.f32 1.0, %v665_v43  ;;  %vm686_vm2 = vmor %vm684_vm0, %vm685_vm1 }
 0x12a   :  { %v681_v55 = vsub.f32 1.0, %v680_v50 }
 0x12b   :  { %v667_v51 = vmul.f32 %v1225_v42, %v666_v49 }
 0x12c   :  { %v682_v61 = vmul.f32 %v1227_v48, %v681_v55 }
 0x12d   :  { %v668_v59 = vadd.f32 %v1225_v42, %v667_v51 }
 0x12e   :  { %v683_v3 = vadd.f32 %v1227_v48, %v682_v61 }
 0x12f   :  { %506 = vadd.xlane.f32.xlu1 %v489_v22  ;;  %v672_v63 = vsel %vm671_vm14, %v1225_v42, %v668_v59 }
 0x130   :  { %v677_v5 = vsel %vm674_vm15, %v676_v62, %v672_v63  ;;  %v687_v10 = vsel %vm686_vm2, %v1227_v48, %v683_v3 }
 0x131   :  { %v692_v14 = vsel %vm689_vm3, %v691_v8, %v687_v10 }
 0x189   :  { %v505_v6 = vpop.xlane.xlu2 %504 }
 0x18a   :  { %v678_v9 = vmul.f32 %v677_v5, %v505_v6 }
 0x192   :  { %v457_v53 = vpop.xlane.xlu0 %456 }
 0x193   :  { %1228 = vlog2.f32 %v457_v53 }
 0x199   :  { %v1229_v0 = vpop.eup %1228 }
 0x19a   :  { %v459_v1 = vpop.xlane.xlu1 %458  ;;  %v905_v7 = vmul.f32 0.6931472, %v1229_v0 }
 0x19b   :  { %1230 = vlog2.f32 %v459_v1 }
 0x19c   :  { %v936_v12 = vsub.f32 %v678_v9, %v905_v7 }
 0x19e   :  { %v952_v17 = vmul.f32 -1.0, %v936_v12 }
 0x1a0   :  { %v968_v20 = vsel %vm616_vm9, %v952_v17, 0.0 }
 0x1a1   :  { %v1231_v11 = vpop.eup %1230 }
 0x1a2   :  { %v907_v13 = vmul.f32 0.6931472, %v1231_v11  ;;  %v507_v15 = vpop.xlane.xlu1 %506 }
 0x1a3   :  { %v693_v16 = vmul.f32 %v692_v14, %v507_v15 }
 0x1a5   :  { %v937_v18 = vsub.f32 %v693_v16, %v907_v13 }
 0x1a7   :  { %v953_v19 = vmul.f32 -1.0, %v937_v18 }
 0x1a9   :  { %v969_v21 = vsel %vm617_vm10, %v953_v19, 0.0 }
 0x1aa   :  { %v984_v22 = vadd.f32 %v969_v21, %v968_v20 }
 0x1ac   :  { %v999_v23 = vrot.slane %v984_v22, 4 }
 0x1ae   :  { %v1000_v27 = vadd.f32 %v999_v23, %v984_v22 }
 0x1b0   :  { %v1001_v28 = vrot.slane %v1000_v27, 2 }
 0x1b2   :  { %v1002_v29 = vadd.f32 %v1001_v28, %v1000_v27 }
 0x1b4   :  { %v1003_v30 = vrot.slane %v1002_v29, 1 }
 0x1b6   :  { %v1004_v31 = vadd.f32 %v1003_v30, %v1002_v29 }
 0x1b8   :  { %1006 = vst.msk [vmem:[#allocation2] sm:$0x1] %vm1005_vm11, %v1004_v31 }
 0x1b9   :  { %1071 = dma.vmem_to_hbm [thread:$0]  %s1067_s7, 16, %s1069_s9, [#allocation3]  }
 0x1ba   :  { %1280 = dma.done.wait [#allocation3], 16  }
 0x1bb   :  { %1281 = vsyncadd [#allocation3], 4294967280 }
 0x1bc   :  { %1282 = dma.done.wait [#allocation5], 16  }
 0x1bd   :  { %1283 = vsyncadd [#allocation5], 4294967280 }
 0x1be   :  { %1091 = vsyncpa [#allocation3], 1 }
 0x1bf   :  { %1092 = vsyncpa [#allocation5], 1 }

</bundles_post_ra>
